<compile_context>
chip_gen: v7x
topology: tpu7x:2x2x1
jax: 0.10.0
libtpu: 0.0.40
codegen_flags: <defaults>
</compile_context>

<pallas_src>
import functools

import jax
import jax.numpy as jnp
from jax.experimental import pallas as pl
from jax.experimental.pallas import tpu as pltpu


_NUM_SPLITS = 2  # batch split across TensorCores (v7x has 2 TCs; no-op on v5e/v6e)


def _cdiv(a, b):
    return -(-a // b)


def _choose_tile_n(n_rows, c, itemsize):
    """Largest row tile whose double-buffered logits tiles fit a ~16 MiB budget."""
    budget = 16 * 1024 * 1024            # bytes for the double-buffered x tiles
    lanes = _cdiv(c, 128) * 128          # lane padding to 128
    per_row = 2 * lanes * max(int(itemsize), 1)
    tile = budget // per_row
    tile = max(8, min(1024, (tile // 8) * 8))
    return int(min(tile, (n_rows // 8) * 8))


def _labelsmooth_ce_kernel(x_ref, t_ref, w_ref, out_ref, acc_ref, *,
                           alpha, n_total, tile_n, tiles_per_split):
    p = pl.program_id(0)   # core split (parallel)
    i = pl.program_id(1)   # row tile within split (arbitrary / accumulated)

    @pl.when(i == 0)
    def _init():
        acc_ref[...] = jnp.zeros_like(acc_ref)

    x = x_ref[...].astype(jnp.float32)          # (TILE_N, C), in-kernel upcast
    t = t_ref[...]                              # (TILE_N, 1) int32
    w = w_ref[...].astype(jnp.float32)          # (1, C)
    tn, c = x.shape

    # one-hot over classes (lane axis); reused for both z[t] and weight[t] gathers
    col = jax.lax.broadcasted_iota(jnp.int32, (tn, c), 1)
    onehot = (col == t).astype(jnp.float32)

    # log-softmax pieces
    m = jnp.max(x, axis=1, keepdims=True)
    z = x - m
    lse = jnp.log(jnp.sum(jnp.exp(z), axis=1, keepdims=True))     # (TILE_N, 1)

    # PyTorch skips the smoothing loop entirely when alpha <= 0.
    if alpha > 0:
        main_coef, a = 1.0 - (alpha + 0.01), float(alpha)
    else:
        main_coef, a = 1.0, 0.0

    # Smoothed-CE numerator folded into ONE cross-lane reduction:
    #   sum_j z_j * (main_coef*onehot_j + a) = main_coef*z[t] + a*sum_j z_j
    num = jnp.sum(z * (onehot * jnp.float32(main_coef) + jnp.float32(a)),
                  axis=1, keepdims=True)                          # (TILE_N, 1)
    w_t = jnp.sum(onehot * w, axis=1, keepdims=True)              # weight[target]

    # loss = -[main_coef*(z[t]-lse) + a*(sum_j z_j - C*lse)] * weight[target]
    lse_coef = jnp.float32(main_coef + a * c)
    loss = -(num - lse_coef * lse) * w_t                          # (TILE_N, 1)

    # mask rows past the true batch size (tail tile / duplicated clamped tile);
    # jnp.where is a select, so garbage/NaN in padded rows never propagates.
    tile_start = (p * tiles_per_split + i) * tile_n
    row = jax.lax.broadcasted_iota(jnp.int32, (tn, 1), 0) + tile_start
    loss = jnp.where(row < n_total, loss, 0.0)

    acc_ref[...] += loss

    @pl.when(i == pl.num_programs(1) - 1)
    def _finalize():
        partial = jnp.sum(acc_ref[...]) * jnp.float32(1.0 / n_total)
        out_ref[...] = jnp.full(out_ref.shape, partial, dtype=jnp.float32)


def labelsmooth_ce_weight_pallas(x, target, per_cls_weight, alpha, *, tile_n=None):
    """x: [N, C] (f32 or bf16), target: [N] int, per_cls_weight: [C] f32 -> scalar."""
    n_total, c = x.shape
    t2 = target.astype(jnp.int32).reshape(n_total, 1)
    w2 = per_cls_weight.astype(jnp.float32).reshape(1, c)

    xr = x
    n_rows = n_total
    if n_rows < 8:                      # tiny-batch fallback: pad to one sublane tile
        pad = 8 - n_rows
        xr = jnp.pad(xr, ((0, pad), (0, 0)))
        t2 = jnp.pad(t2, ((0, pad), (0, 0)))
        n_rows = 8

    if tile_n is None:
        tile_n = _choose_tile_n(n_rows, c, xr.dtype.itemsize)
    tile_n = int(max(8, (int(tile_n) // 8) * 8))
    tile_n = int(min(tile_n, (n_rows // 8) * 8))

    num_tiles = _cdiv(n_rows, tile_n)
    tiles_per_split = _cdiv(num_tiles, _NUM_SPLITS)

    def row_block(p, i):
        # clamp: the split may nominally cover a few more tiles than exist; the
        # duplicated blocks are fully masked inside the kernel (their nominal
        # start row is >= n_total by construction).
        return (jnp.minimum(p * tiles_per_split + i, num_tiles - 1), 0)

    kernel = functools.partial(
        _labelsmooth_ce_kernel, alpha=float(alpha), n_total=int(n_total),
        tile_n=tile_n, tiles_per_split=int(tiles_per_split))

    out = pl.pallas_call(
        kernel,
        out_shape=jax.ShapeDtypeStruct((_NUM_SPLITS * 8, 128), jnp.float32),
        grid_spec=pltpu.PrefetchScalarGridSpec(
            num_scalar_prefetch=0,
            grid=(_NUM_SPLITS, tiles_per_split),
            in_specs=[
                pl.BlockSpec((tile_n, c), row_block),       # logits tile
                pl.BlockSpec((tile_n, 1), row_block),       # target tile
                pl.BlockSpec((1, c), lambda p, i: (0, 0)),  # per-class weights
            ],
            out_specs=pl.BlockSpec((8, 128), lambda p, i: (p, 0)),
            scratch_shapes=[pltpu.VMEM((tile_n, 1), jnp.float32)],
        ),
        compiler_params=pltpu.CompilerParams(
            dimension_semantics=("parallel", "arbitrary"),
            vmem_limit_bytes=32 * 1024 * 1024,
        ),
    )(xr, t2, w2)

    # one already-normalized partial per core split; tiny scalar combine outside
    return jnp.sum(out[::8, 0])


class LabelSmoothCEWeightPallas:
    """JAX/Pallas port of util/loss.py::LabelSmooth_CE_weight forward."""

    def __init__(self, cls_num_list, labelsmoothing_alpha=0.05, E1=20, E2=50, E=100):
        self.cls_num_list = list(cls_num_list)
        cls_num = jnp.asarray(self.cls_num_list, dtype=jnp.float32)
        w = 1.0 / cls_num
        self.weight = w / jnp.sum(w) * len(self.cls_num_list)
        self.labelsmoothing_alpha = labelsmoothing_alpha
        self.E1 = E1
        self.E2 = E2
        self.E = E

    def __call__(self, x, target, e, f1_score=(1.0, 1.0), *, tile_n=None):
        c = x.shape[1]
        if e <= self.E1:
            per_cls_weights = jnp.ones((c,), dtype=jnp.float32)   # unweighted case
        elif e <= self.E2:
            now_power = (e - self.E1) / (self.E2 - self.E1)
            per_cls_weights = jnp.power(self.weight, now_power)
        else:
            f1 = jnp.asarray(f1_score, dtype=jnp.float32)
            w = 1.0 / f1
            self.weight = w / jnp.sum(w) * len(self.cls_num_list)
            now_power = (e - self.E2) / (self.E - self.E2)
            per_cls_weights = jnp.power(self.weight, now_power)
        return labelsmooth_ce_weight_pallas(
            x, target, per_cls_weights, self.labelsmoothing_alpha, tile_n=tile_n)


def _reference(x, target, per_cls_weight, alpha):
    """Pure-JAX reference for sanity checking."""
    n, c = x.shape
    onehot = jax.nn.one_hot(target, c, dtype=jnp.float32)
    smooth = onehot * (1.0 - (alpha + 0.01)) + alpha if alpha > 0 else onehot
    log_prob = jax.nn.log_softmax(x.astype(jnp.float32), axis=1)
    loss = -jnp.sum(log_prob * smooth, axis=1)
    loss = loss * per_cls_weight[target]
    return jnp.mean(loss)


if __name__ == "__main__":
    key = jax.random.PRNGKey(0)
    kx, kt, kx2, kt2, kx3, kt3 = jax.random.split(key, 6)

    # Primary test: non-(8,128)-aligned shapes + small forced tile so that the
    # multi-tile accumulator, the clamped split tile and the tail mask all run.
    N, C = 100, 37
    x = jax.random.normal(kx, (N, C), dtype=jnp.float32)
    target = jax.random.randint(kt, (N,), 0, C, dtype=jnp.int32)

    cls_num_list = [100 + 37 * i for i in range(C)]
    mod = LabelSmoothCEWeightPallas(cls_num_list, labelsmoothing_alpha=0.05,
                                    E1=20, E2=50, E=100)

    for e in (10, 35, 80):
        f1 = [0.7 + 0.01 * i for i in range(C)] if e > 50 else [1.0, 1.0]
        got = jax.block_until_ready(mod(x, target, e, f1_score=f1, tile_n=16))
        if e <= 20:
            wref = jnp.ones((C,), jnp.float32)
        elif e <= 50:
            w = 1.0 / jnp.asarray(cls_num_list, jnp.float32)
            w = w / jnp.sum(w) * C
            wref = jnp.power(w, (e - 20) / (50 - 20))
        else:
            w = 1.0 / jnp.asarray(f1, jnp.float32)
            w = w / jnp.sum(w) * C
            wref = jnp.power(w, (e - 50) / (100 - 50))
        ref = _reference(x, target, wref, 0.05)
        assert jnp.allclose(got, ref, atol=1e-4, rtol=1e-5), (e, got, ref)

    # bf16 logits (native-dtype DMA + in-kernel upcast), auto tile size.
    xb = jax.random.normal(kx2, (64, 256), dtype=jnp.bfloat16)
    tb = jax.random.randint(kt2, (64,), 0, 256, dtype=jnp.int32)
    wb = jnp.ones((256,), jnp.float32)
    got_b = jax.block_until_ready(labelsmooth_ce_weight_pallas(xb, tb, wb, 0.05))
    ref_b = _reference(xb, tb, wb, 0.05)
    assert jnp.allclose(got_b, ref_b, atol=1e-4, rtol=1e-4), (got_b, ref_b)

    # tiny-batch fallback path (N < 8).
    xs = jax.random.normal(kx3, (4, 16), dtype=jnp.float32)
    ts = jax.random.randint(kt3, (4,), 0, 16, dtype=jnp.int32)
    ws = jnp.ones((16,), jnp.float32)
    got_s = jax.block_until_ready(labelsmooth_ce_weight_pallas(xs, ts, ws, 0.05))
    ref_s = _reference(xs, ts, ws, 0.05)
    assert jnp.allclose(got_s, ref_s, atol=1e-5, rtol=1e-5), (got_s, ref_s)

    print("KERNEL_OK")
</pallas_src>

<mosaic_0001>
module attributes {stable_mosaic.version = 11 : i64} {
  func.func @_labelsmooth_ce_kernel(%arg0: i32, %arg1: i32, %arg2: memref<16x37xf32, #tpu.memory_space<vmem>>, %arg3: memref<16x1xi32, #tpu.memory_space<vmem>>, %arg4: memref<1x37xf32, #tpu.memory_space<vmem>>, %arg5: memref<8x128xf32, #tpu.memory_space<vmem>>, %arg6: memref<16x1xf32, #tpu.memory_space<vmem>>) attributes {dimension_semantics = [#tpu.dimension_semantics<parallel>, #tpu.dimension_semantics<arbitrary>], iteration_bounds = array<i64: 2, 4>, scalar_prefetch = 0 : i64, scratch_operands = 1 : i64, tpu.core_type = #tpu.core_type<tc>, window_params = [{transform_indices = @transform_0, window_bounds = array<i64: 16, 37>}, {transform_indices = @transform_1, window_bounds = array<i64: 16, 1>}, {pipeline_mode = #tpu.pipeline_mode<synchronous>, transform_indices = @transform_2, window_bounds = array<i64: 1, 37>}, {transform_indices = @transform_3, window_bounds = array<i64: 8, 128>}]} {
    %c0_i32 = arith.constant 0 : i32
    %0 = arith.cmpi eq, %arg1, %c0_i32 : i32
    %1 = arith.extui %0 : i1 to i32
    %c0_i32_0 = arith.constant 0 : i32
    %2 = arith.cmpi ne, %1, %c0_i32_0 : i32
    scf.if %2 {
      %cst_19 = arith.constant 0.000000e+00 : f32
      %52 = vector.broadcast %cst_19 : f32 to vector<16x1xf32>
      %c0_20 = arith.constant 0 : index
      %c0_21 = arith.constant 0 : index
      %53 = vector.load %arg6[%c0_20, %c0_21] : memref<16x1xf32, #tpu.memory_space<vmem>>, vector<16x1xf32>
      tpu.vector_store %arg6[%c0_20, %c0_21], %52 {strides = array<i32>} : memref<16x1xf32, #tpu.memory_space<vmem>>, vector<16x1xf32>,
    } else {
    }
    %c0 = arith.constant 0 : index
    %c0_1 = arith.constant 0 : index
    %3 = vector.load %arg2[%c0, %c0_1] : memref<16x37xf32, #tpu.memory_space<vmem>>, vector<16x37xf32>
    %c0_2 = arith.constant 0 : index
    %c0_3 = arith.constant 0 : index
    %4 = vector.load %arg3[%c0_2, %c0_3] : memref<16x1xi32, #tpu.memory_space<vmem>>, vector<16x1xi32>
    %c0_4 = arith.constant 0 : index
    %c0_5 = arith.constant 0 : index
    %5 = vector.load %arg4[%c0_4, %c0_5] : memref<1x37xf32, #tpu.memory_space<vmem>>, vector<1x37xf32>
    %6 = tpu.iota {dimensions = array<i32: 1>} : vector<16x37xi32>
    %7 = vector.broadcast %4 : vector<16x1xi32> to vector<16x37xi32>
    %8 = arith.cmpi eq, %6, %7 : vector<16x37xi32>
    %9 = arith.extui %8 : vector<16x37xi1> to vector<16x37xi32>
    %10 = arith.sitofp %9 : vector<16x37xi32> to vector<16x37xf32>
    %cst = arith.constant dense<0xFF800000> : vector<16xf32>
    %11 = vector.multi_reduction <maximumf>, %3, %cst [1] : vector<16x37xf32> to vector<16xf32>
    %12 = vector.shape_cast %11 : vector<16xf32> to vector<16x1xf32>
    %13 = vector.broadcast %12 : vector<16x1xf32> to vector<16x37xf32>
    %14 = arith.subf %3, %13 : vector<16x37xf32>
    %15 = math.exp %14 : vector<16x37xf32>
    %cst_6 = arith.constant dense<0.000000e+00> : vector<16xf32>
    %16 = vector.multi_reduction <add>, %15, %cst_6 [1] : vector<16x37xf32> to vector<16xf32>
    %17 = vector.shape_cast %16 : vector<16xf32> to vector<16x1xf32>
    %18 = math.log %17 : vector<16x1xf32>
    %cst_7 = arith.constant 0.939999997 : f32
    %19 = vector.broadcast %cst_7 : f32 to vector<16x37xf32>
    %20 = arith.mulf %10, %19 : vector<16x37xf32>
    %cst_8 = arith.constant 5.000000e-02 : f32
    %21 = vector.broadcast %cst_8 : f32 to vector<16x37xf32>
    %22 = arith.addf %20, %21 : vector<16x37xf32>
    %23 = arith.mulf %14, %22 : vector<16x37xf32>
    %cst_9 = arith.constant dense<0.000000e+00> : vector<16xf32>
    %24 = vector.multi_reduction <add>, %23, %cst_9 [1] : vector<16x37xf32> to vector<16xf32>
    %25 = vector.shape_cast %24 : vector<16xf32> to vector<16x1xf32>
    %26 = vector.broadcast %5 : vector<1x37xf32> to vector<16x37xf32>
    %27 = arith.mulf %10, %26 : vector<16x37xf32>
    %cst_10 = arith.constant dense<0.000000e+00> : vector<16xf32>
    %28 = vector.multi_reduction <add>, %27, %cst_10 [1] : vector<16x37xf32> to vector<16xf32>
    %29 = vector.shape_cast %28 : vector<16xf32> to vector<16x1xf32>
    %cst_11 = arith.constant 2.790000e+00 : f32
    %30 = vector.broadcast %cst_11 : f32 to vector<16x1xf32>
    %31 = arith.mulf %30, %18 : vector<16x1xf32>
    %32 = arith.subf %25, %31 : vector<16x1xf32>
    %cst_12 = arith.constant 0.000000e+00 : f32
    %33 = vector.broadcast %cst_12 : f32 to vector<16x1xf32>
    %34 = arith.subf %33, %32 : vector<16x1xf32>
    %35 = arith.mulf %34, %29 : vector<16x1xf32>
    %c4_i32 = arith.constant 4 : i32
    %36 = arith.muli %arg0, %c4_i32 : i32
    %37 = arith.addi %36, %arg1 : i32
    %c16_i32 = arith.constant 16 : i32
    %38 = arith.muli %37, %c16_i32 : i32
    %39 = tpu.iota {dimensions = array<i32: 0>} : vector<16x1xi32>
    %40 = vector.broadcast %38 : i32 to vector<16x1xi32>
    %41 = arith.addi %39, %40 : vector<16x1xi32>
    %c100_i32 = arith.constant 100 : i32
    %42 = vector.broadcast %c100_i32 : i32 to vector<16x1xi32>
    %43 = arith.cmpi slt, %41, %42 : vector<16x1xi32>
    %cst_13 = arith.constant 0.000000e+00 : f32
    %44 = vector.broadcast %cst_13 : f32 to vector<16x1xf32>
    %45 = arith.select %43, %35, %44 : vector<16x1xi1>, vector<16x1xf32>
    %c0_14 = arith.constant 0 : index
    %c0_15 = arith.constant 0 : index
    %46 = vector.load %arg6[%c0_14, %c0_15] : memref<16x1xf32, #tpu.memory_space<vmem>>, vector<16x1xf32>
    %47 = arith.addf %46, %45 : vector<16x1xf32>
    %c0_16 = arith.constant 0 : index
    %c0_17 = arith.constant 0 : index
    %48 = vector.load %arg6[%c0_16, %c0_17] : memref<16x1xf32, #tpu.memory_space<vmem>>, vector<16x1xf32>
    tpu.vector_store %arg6[%c0_16, %c0_17], %47 {strides = array<i32>} : memref<16x1xf32, #tpu.memory_space<vmem>>, vector<16x1xf32>,
    %c3_i32 = arith.constant 3 : i32
    %49 = arith.cmpi eq, %arg1, %c3_i32 : i32
    %50 = arith.extui %49 : i1 to i32
    %c0_i32_18 = arith.constant 0 : i32
    %51 = arith.cmpi ne, %50, %c0_i32_18 : i32
    scf.if %51 {
      %c0_19 = arith.constant 0 : index
      %c0_20 = arith.constant 0 : index
      %52 = vector.load %arg6[%c0_19, %c0_20] : memref<16x1xf32, #tpu.memory_space<vmem>>, vector<16x1xf32>
      %53 = vector.shape_cast %52 : vector<16x1xf32> to vector<1x16x1xf32>
      %cst_21 = arith.constant dense<0.000000e+00> : vector<1xf32>
      %54 = vector.multi_reduction <add>, %53, %cst_21 [1, 2] : vector<1x16x1xf32> to vector<1xf32>
      %55 = vector.shape_cast %54 : vector<1xf32> to vector<1x1x1xf32>
      %56 = vector.extract %55[0, 0, 0] : f32 from vector<1x1x1xf32>
      %cst_22 = arith.constant 0.00999999977 : f32
      %57 = arith.mulf %56, %cst_22 : f32
      %58 = vector.broadcast %57 : f32 to vector<8x128xf32>
      %c0_23 = arith.constant 0 : index
      %c0_24 = arith.constant 0 : index
      %59 = vector.load %arg5[%c0_23, %c0_24] : memref<8x128xf32, #tpu.memory_space<vmem>>, vector<8x128xf32>
      tpu.vector_store %arg5[%c0_23, %c0_24], %58 {strides = array<i32>} : memref<8x128xf32, #tpu.memory_space<vmem>>, vector<8x128xf32>,
    } else {
    }
    return
  }
  func.func @transform_0(%arg0: i32, %arg1: i32) -> (i32, i32) {
    %c4_i32 = arith.constant 4 : i32
    %0 = arith.muli %arg0, %c4_i32 : i32
    %1 = arith.addi %0, %arg1 : i32
    %c6_i32 = arith.constant 6 : i32
    %2 = arith.minsi %1, %c6_i32 : i32
    %c0_i32 = arith.constant 0 : i32
    %c0_i32_0 = arith.constant 0 : i32
    return %2, %c0_i32 : i32, i32
  }
  func.func @transform_1(%arg0: i32, %arg1: i32) -> (i32, i32) {
    %c4_i32 = arith.constant 4 : i32
    %0 = arith.muli %arg0, %c4_i32 : i32
    %1 = arith.addi %0, %arg1 : i32
    %c6_i32 = arith.constant 6 : i32
    %2 = arith.minsi %1, %c6_i32 : i32
    %c0_i32 = arith.constant 0 : i32
    %c0_i32_0 = arith.constant 0 : i32
    return %2, %c0_i32 : i32, i32
  }
  func.func @transform_2(%arg0: i32, %arg1: i32) -> (i32, i32) {
    %c0_i32 = arith.constant 0 : i32
    %c0_i32_0 = arith.constant 0 : i32
    %c0_i32_1 = arith.constant 0 : i32
    return %c0_i32, %c0_i32_0 : i32, i32
  }
  func.func @transform_3(%arg0: i32, %arg1: i32) -> (i32, i32) {
    %c0_i32 = arith.constant 0 : i32
    %c0_i32_0 = arith.constant 0 : i32
    return %arg0, %c0_i32 : i32, i32
  }
}

</mosaic_0001>

<bundles_post_ra>
// kernel: tpu_custom_call.1
= control target key start
LH: loop header
LB: loop body
LE: loop exit
PB: predicated region body
PF: predicated region fallthrough
CT: control target
= control target key end

     0   :  { %8 = vsyncpa [#allocation4], 0  ;;  %s916_s0 = inlined_call_operand.vmem [shape: f32[100,37], index: 0, kind: input, shape index: {}]   ;;  %s917_s1 = inlined_call_operand.vmem [shape: s32[100,1], index: 1, kind: input, shape index: {}]   ;;  %s918_s2 = inlined_call_operand.vmem [shape: f32[1,37], index: 2, kind: input, shape index: {}]   ;;  %s919_s3 = inlined_call_operand.hbm [shape: f32[16,128], index: 3, kind: output, shape index: {}]  }
   0x1   :  { %10 = vsyncpa [#allocation4 + $0x1], 0  ;;  %s754_s12 = smov 0   ;;  %s756_s13 = smov 0  }
   0x2   :  { %s758_s14 = smov 0   ;;  %s760_s15 = smov 0  }
   0x3   :  { %s762_s16 = smov 0   ;;  %s764_s17 = smov 0  }
   0x4   :  { %s766_s18 = smov 0   ;;  %s768_s19 = smov 0  }
   0x5 LB: > { %s521_s20 = sadd.s32 4294967295, %s728_s19   ;;  %s522_s21 = sadd.s32 4294967294, %s728_s19   ;;  %s728_s19 = sphi %s768_s19, %s16_s19   ;;  %s724_s18 = sphi %s766_s18, %s928_s18   ;;  %s720_s17 = sphi %s764_s17, %s927_s17   ;;  %s716_s16 = sphi %s762_s16, %s926_s16   ;;  %s712_s15 = sphi %s760_s15, %s925_s15   ;;  %s708_s14 = sphi %s758_s14, %s924_s14   ;;  %s704_s13 = sphi %s756_s13, %s923_s13   ;;  %s700_s12 = sphi %s754_s12, %s922_s12  }
   0x6   : > { %s25_s22 = sadd.s32 1, %s720_s17  ;;  %s28_s23 = sadd.s32 1, %s724_s18 }
   0x7   : > { %p26_p0 = scmp.ge.s32.totalorder %s25_s22, 4  ;;  %p134_p1 = scmp.ne.s32.totalorder %s708_s14, %s704_s13 }
   0x8   : > { %p135_p2 = scmp.eq.s32.totalorder %s521_s20, 7  ;;  %p140_p4 = scmp.ne.s32.totalorder %s704_s13, %s700_s12 }
   0x9   : > { %s930_s22 = smov (%p26_p0, %s25_s22), 0  ;;  %s932_s23 = smov (!%p26_p0, %s28_s23), %s724_s18 }
   0xa   : > { %p803_p3 = por %p135_p2, %p134_p1  ;;  %p30_p5 = scmp.ge.s32.totalorder %s932_s23, 2 }
   0xb   : > { %p141_p6 = scmp.eq.s32.totalorder %s522_s21, 7  ;;  %p529_p7 = scmp.ge.s32.totalorder %s728_s19, 1 }
   0xc   : > { %p212_p8 = scmp.lt.s32.totalorder %s728_s19, 9  ;;  %s934_s23 = smov (%p30_p5, %s932_s23), 0 }
   0xd   : > { %p813_p9 = por %p141_p6, %p140_p4  ;;  %s121_s26 = ssub.s32 %s724_s18, %s934_s23 }
   0xe   : > { %p213_p10 = pnand %p529_p7, %p212_p8  ;;  %s124_s27 = sadd.s32 1, %s708_s14 }
   0xf   : > { %p122_p11 = scmp.eq.s32.totalorder %s121_s26, 0  ;;  %s254_s29 = sand.u32 (!%p213_p10), 1, %s704_s13  }
  0x10   : > { %216 = sbr.rel (%p213_p10) target bundleno = 604 (0x25c), region = 32  ;;  %s531_s30 = sshll.u32 (!%p213_p10), %s716_s16, 2 }
  0x11   : > { %s821_s28 = scalar_select %p122_p11, %s708_s14, %s124_s27  }
  0x12   : > { %s827_s4 = sshll.u32 (!%p213_p10), %s254_s29, 3  ;;  %s830_s5 = sadd.s32 (!%p213_p10), %s712_s15, %s531_s30 }
  0x13   : > { %p259_p12 = scmp.lt.s32.totalorder (!%p213_p10), %s830_s5, 6  ;;  %s256_s27 = scalar_lea.vmem (!%p213_p10), [#allocation3], %s827_s4 }
  0x14   : > { %p537_p0 = scmp.ne.s32.totalorder (!%p213_p10), %s712_s15, 0 }
  0x17   : > { %s260_s6 = scalar_select %p259_p12, %s830_s5, 6 }
  0x18   : > { %304 = sbr.rel (%p537_p0) target bundleno = 31 (0x1f), region = 36  ;;  %vm305_vm0 = vcmask (!%p537_p0), 7168   ;;  %v730_v0 = vmov (!%p537_p0), 0.0  }
  0x19   : > { %s532_s7 = sshll.u32 %s260_s6, 1  ;;  %306 = vst.msk [vmem:[#allocation2] sm:$0xff] (!%p537_p0), %vm305_vm0, %v730_v0  ;;  %307 = vst.msk [vmem:[#allocation2 + $0x8] sm:$0xff] (!%p537_p0), %vm305_vm0, %v730_v0 }
  0x1a   : > { %p266_p13 = scmp.lt.s32.totalorder %s532_s7, 12 }
  0x1c   : > { %s936_s7 = smov (!%p266_p13, %s532_s7), 12 }
  0x1d   : > { %s533_s8 = sshll.u32 %s936_s7, 3 }
  0x1e   : > { %s269_s11 = scalar_lea.vmem %s916_s0, %s533_s8  ;;  %s291_s26 = scalar_lea.vmem %s917_s1, %s533_s8 }
  0x1f PF: > { %v308_v1 = vld [vmem:[%s269_s11] sm:$0xff]  ;;  %vm327_vm1 = vcmask 302080   ;;  %v309_v2 = vld [vmem:[%s269_s11 + $0x8] sm:$0xff]  ;;  %v731_v5 = vmov 0   ;;  %v313_v8 = vlaneseq  ;;  %v732_v16 = vmov 0.0   ;;  %s542_s7 = sshll.u32 %s830_s5, 4 }
  0x20   : > { %v310_v3 = vld [vmem:[%s291_s26] sm:$0xff]  ;;  %v328_v4 = vsel %vm327_vm1, %v308_v1, -inf  ;;  %624 = vset.pattern.permute.xlu1 %v731_v5  ;;  %625 = vset.pattern.permute.xlu0 %v731_v5  ;;  %v331_v6 = vsel %vm327_vm1, %v309_v2, -inf  ;;  %v311_v7 = vld [vmem:[%s291_s26 + $0x8] sm:$0xff]  ;;  %v390_v45 = vstv %s542_s7  ;;  %vm401_vm5 = vcmask 7168   ;;  %p543_p1 = scmp.ne.s32.totalorder %s712_s15, 3 }
  0x21   : > { %329 = vmax.xlane.f32.xlu0 %v328_v4  ;;  %316 = vperm.xlu1 %624, %v310_v3   ;;  %v314_v10 = vand.u32 127, %v313_v8  ;;  %v540_v32 = vld [vmem:[%s918_s2] ss:$0 sm:$0xff]  ;;  %v388_v43 = vshrl.u32 %v313_v8, 7  ;;  %v398_v63 = vld [vmem:[#allocation2 + $0x8] sm:$0xff] }
  0x22   : > { %v397_v57 = vld [vmem:[#allocation2] sm:$0xff] }
  0x23   : > { %v391_v48 = vadd.s32 %v390_v45, %v388_v43  ;;  %v389_v49 = vadd.s32 8, %v388_v43 }
  0x25   : > { %332 = vmax.xlane.f32.xlu0 %v331_v6  ;;  %319 = vperm.xlu1 %624, %v311_v7   ;;  %vm393_vm4 = vcmp.lt.s32.totalorder %v391_v48, 100  ;;  %v392_v55 = vadd.s32 %v390_v45, %v389_v49 }
  0x27   : > { %vm394_vm6 = vcmp.lt.s32.totalorder %v392_v55, 100 }
  0xa0   : > { %v317_v9 = vpop.permute.xlu1 %316 }
  0xa1   : > { %vm321_vm2 = vcmp.eq.s32.totalorder %v314_v10, %v317_v9 }
  0xa2   : > { %v538_v17 = vsel %vm321_vm2, 1.0, %v732_v16 }
  0xa3   : > { %v350_v20 = vmul.f32 0.94, %v538_v17  ;;  %v368_v34 = vmul.f32 %v540_v32, %v538_v17 }
  0xa4   : > { %v320_v13 = vpop.permute.xlu1 %319 }
  0xa5   : > { %vm322_vm3 = vcmp.eq.s32.totalorder %v314_v10, %v320_v13  ;;  %v352_v22 = vadd.f32 0.05, %v350_v20  ;;  %v370_v35 = vsel %vm327_vm1, %v368_v34, 0.0 }
  0xa6   : > { %v539_v21 = vsel %vm322_vm3, 1.0, %v732_v16 }
  0xa7   : > { %v351_v23 = vmul.f32 0.94, %v539_v21  ;;  %v369_v36 = vmul.f32 %v540_v32, %v539_v21 }
  0xa9   : > { %v353_v25 = vadd.f32 0.05, %v351_v23  ;;  %v373_v37 = vsel %vm327_vm1, %v369_v36, 0.0 }
  0xae   : > { %v330_v11 = vpop.xlane.xlu0 %329 }
  0xaf   : > { %v334_v12 = vsub.f32 %v308_v1, %v330_v11 }
  0xb1   : > { %v336_v14 = vmul.f32 1.442695, %v334_v12  ;;  %v354_v27 = vmul.f32 %v352_v22, %v334_v12 }
  0xb2   : > { %v333_v15 = vpop.xlane.xlu0 %332 }
  0xb3   : > { %626 = vpow2.f32 %v336_v14  ;;  %v335_v18 = vsub.f32 %v309_v2, %v333_v15  ;;  %v356_v29 = vsel %vm327_vm1, %v354_v27, 0.0 }
  0xb5   : > { %v338_v19 = vmul.f32 1.442695, %v335_v18  ;;  %v355_v31 = vmul.f32 %v353_v25, %v335_v18 }
  0xb7   : > { %628 = vpow2.f32 %v338_v19  ;;  %v359_v33 = vsel %vm327_vm1, %v355_v31, 0.0 }
  0xbd   : > { %v627_v24 = vpop.eup %626 }
  0xbe   : > { %v340_v26 = vsel %vm327_vm1, %v627_v24, 0.0 }
  0xbf   : > { %341 = vadd.xlane.f32.xlu0 %v340_v26 }
  0xc1   : > { %v629_v28 = vpop.eup %628 }
  0xc2   : > { %v343_v30 = vsel %vm327_vm1, %v629_v28, 0.0 }
  0xc3   : > { %357 = vadd.xlane.f32.xlu0 %v356_v29  ;;  %344 = vadd.xlane.f32.xlu1 %v343_v30 }
  0xc7   : > { %360 = vadd.xlane.f32.xlu0 %v359_v33 }
  0xcb   : > { %371 = vadd.xlane.f32.xlu0 %v370_v35 }
  0xcf   : > { %374 = vadd.xlane.f32.xlu0 %v373_v37 }
 0x14c   : > { %v342_v38 = vpop.xlane.xlu0 %341 }
 0x14d   : > { %630 = vlog2.f32 %v342_v38 }
 0x150   : > { %v345_v39 = vpop.xlane.xlu1 %344  ;;  %v358_v40 = vpop.xlane.xlu0 %357 }
 0x151   : > { %632 = vlog2.f32 %v345_v39 }
 0x154   : > { %v361_v42 = vpop.xlane.xlu0 %360 }
 0x157   : > { %v631_v41 = vpop.eup %630 }
 0x158   : > { %v347_v44 = vmul.f32 0.6931472, %v631_v41  ;;  %v372_v52 = vpop.xlane.xlu0 %371 }
 0x15a   : > { %v376_v46 = vmul.f32 2.79, %v347_v44 }
 0x15b   : > { %v633_v47 = vpop.eup %632 }
 0x15c   : > { %v349_v50 = vmul.f32 0.6931472, %v633_v47  ;;  %v378_v51 = vsub.f32 %v358_v40, %v376_v46  ;;  %v375_v62 = vpop.xlane.xlu0 %374 }
 0x15e   : > { %v380_v53 = vsub.f32 0.0, %v378_v51  ;;  %v377_v54 = vmul.f32 2.79, %v349_v50 }
 0x160   : > { %v379_v56 = vsub.f32 %v361_v42, %v377_v54  ;;  %v382_v58 = vmul.f32 %v380_v53, %v372_v52 }
 0x162   : > { %v381_v59 = vsub.f32 0.0, %v379_v56  ;;  %v395_v60 = vsel %vm393_vm4, %v382_v58, 0.0 }
 0x163   : > { %v399_v61 = vadd.f32 %v397_v57, %v395_v60  ;;  %407 = sbr.rel (%p543_p1) target bundleno = 580 (0x244), region = 40 }
 0x164   : > { %v383_v0 = vmul.f32 %v381_v59, %v375_v62 }
 0x165   : > { %402 = vst.msk [vmem:[#allocation2] sm:$0xff] %vm401_vm5, %v399_v61 }
 0x166   : > { %v396_v1 = vsel %vm394_vm6, %v383_v0, 0.0 }
 0x167   : > { %v400_v2 = vadd.f32 %v398_v63, %v396_v1 }
 0x169   : > { %403 = vst.msk [vmem:[#allocation2 + $0x8] sm:$0xff] %vm401_vm5, %v400_v2 }
 0x16c   : > { %v408_v3 = vld [vmem:[#allocation2] sm:$0xff] }
 0x16d   : > { %v410_v5 = vsel %vm401_vm5, %v408_v3, 0.0 }
 0x170   : > { %v409_v4 = vld [vmem:[#allocation2 + $0x8] sm:$0xff] }
 0x171   : > { %v411_v6 = vsel %vm401_vm5, %v409_v4, 0.0 }
 0x172   : > { %v412_v7 = vadd.f32 %v411_v6, %v410_v5 }
 0x174   : > { %413 = vadd.xlane.f32.xlu0 %v412_v7 }
 0x201   : > { %v414_v8 = vpop.xlane.xlu0 %413 }
 0x202   : > { %v415_v9 = vrot.slane %v414_v8, 4 }
 0x204   : > { %v416_v10 = vadd.f32 %v415_v9, %v414_v8 }
 0x206   : > { %v417_v11 = vrot.slane %v416_v10, 2 }
 0x208   : > { %v418_v12 = vadd.f32 %v417_v11, %v416_v10 }
 0x20a   : > { %v419_v13 = vrot.slane %v418_v12, 1 }
 0x20c   : > { %v420_v14 = vadd.f32 %v419_v13, %v418_v12 }
 0x20e   : > { %548 = vpush %v420_v14 }
 0x23f   : > { %s549_s5 = spop %548 }
 0x240   : > { %s422_s15 = smul.f32 0.01, %s549_s5 }
 0x242   : > { %v423_v15 = vstv %s422_s15 }
 0x243   : > { %424 = vst [vmem:[%s256_s27] sm:$0xff] %v423_v15 }
 0x244 PF: > { %s545_s8 = sshll.u32 %s716_s16, 7  ;;  %s439_s20 = sshll.u32 %s256_s27, 4  ;;  %s440_s20 = int_to_ptr.vmem [resolvable:$true] %s439_s20 }
 0x245   : > { %s865_s11 = scalar_lea.hbm %s919_s3, %s545_s8  ;;  %s426_s21 = scalar_lea.sflag [#allocation4], %s254_s29 }
 0x246   : > { %s634_s26 = scalar_lea.vmem %s440_s20, 128  ;;  %s733_s30 = smov [#allocation3]  }
 0x247   : > { %p635_p2 = scmp.ne.s32.totalorder %s440_s20, %s634_s26  ;;  %s638_s6 = sshll.u32 %s733_s30, 4  ;;  %s639_s6 = int_to_ptr.vmem [resolvable:$false] %s638_s6 }
 0x248   : > { %s640_s7 = scalar_lea.vmem %s639_s6, 256  ;;  %p641_p6 = scmp.lt.s32.totalorder %s440_s20, %s639_s6 }
 0x249   : > { %p636_p4 = pnand %p635_p2, %p803_p3  ;;  %p642_p7 = scmp.lt.s32.totalorder %s640_s7, %s634_s26 }
 0x24b   : > { %p637_p5 = pneg %p636_p4  ;;  %p643_p8 = por %p642_p7, %p641_p6 }
 0x24d   : > { %p644_p10 = pnand %p643_p8, %p637_p5 }
 0x24f   : > { %647 = shalt.err (!%p644_p10)
}
 0x250   : > { %s648_s16 = scalar_lea.hbm %s865_s11, 128  ;;  %s652_s27 = scalar_lea.hbm %s919_s3, 256 }
 0x251   : > { %p649_p11 = scmp.ne.s32.totalorder %s865_s11, %s648_s16  ;;  %p653_p0 = scmp.lt.u32.totalorder %s865_s11, %s919_s3 }
 0x252   : > { %p654_p1 = scmp.lt.u32.totalorder %s652_s27, %s648_s16  ;;  %p656_p4 = scmp.lt.u32.totalorder %s648_s16, %s865_s11 }
 0x253   : > { %p650_p12 = pnand %p649_p11, %p803_p3 }
 0x254   : > { %p655_p2 = por %p654_p1, %p653_p0 }
 0x255   : > { %p651_p13 = pneg %p650_p12 }
 0x256   : > { %p657_p5 = por %p656_p4, %p655_p2 }
 0x258   : > { %p658_p6 = pnand %p657_p5, %p651_p13 }
 0x25a   : > { %661 = shalt.err (!%p658_p6)
}
 0x25b   : > { %550 = dma.vmem_to_hbm [thread:$0]  (%p803_p3), %s440_s20, 128, %s865_s11, %s426_s21  }
 0x25c PF: > { %p556_p7 = scmp.ge.s32.totalorder %s728_s19, 2  ;;  %s451_s8 = sand.u32 1, %s700_s12  }
 0x25d   : > { %s452_s9 = scalar_lea.sflag [#allocation4], %s451_s8 }
 0x25e   : > { %p553_p8 = pnand %p556_p7, %p813_p9 }
 0x260   : > { %695 = dma.done.wait (!%p553_p8), %s452_s9, 128  }
 0x261   : > { %697 = vsyncadd (!%p553_p8), %s452_s9, 4294967168  ;;  %s16_s19 = sadd.s32 1, %s728_s19   ;;  %s922_s12 = smov %s704_s13 }
 0x262   : > { %p13_p10 = scmp.ge.s32.totalorder %s16_s19, 10   ;;  %s923_s13 = smov %s708_s14 }
 0x263   : > { %s924_s14 = smov %s821_s28  ;;  %s925_s15 = smov %s720_s17 }
 0x264   : > { %s926_s16 = smov %s724_s18  ;;  %s927_s17 = smov %s930_s22 }
 0x265   : > { %s928_s18 = smov %s934_s23  ;;  %15 = sbr.rel (!%p13_p10) target bundleno = 5 (0x5), region = 78 }
 0x26c   :  { %457 = vsyncpa [#allocation4], 1 }
 0x26d   :  { %459 = vsyncpa [#allocation4 + $0x1], 1 }

</bundles_post_ra>
